<compile_context>
chip_gen: v5e
topology: v5e:2x2
jax: 0.10.0
libtpu: 0.0.40
codegen_flags: <defaults>
</compile_context>

<pallas_src>
import jax
import jax.numpy as jnp
from jax.experimental import pallas as pl
from jax.experimental.pallas import tpu as pltpu

_LANES = 128
_SUBLANES = 8


def _heatmap_slab(x):
    """Flatten a heatmap to a lane-dense (rows, 128) slab, keeping its dtype.

    Pure (free) reshape when numel is a multiple of 128; otherwise only a
    minimal zero tail is appended (zeros contribute exactly 0 to the focal
    loss and to num_keypoints with the select-gated log below).
    """
    flat = jnp.ravel(x)
    n = flat.shape[0]
    rem = n % _LANES
    if rem:
        # TODO(synk): rare ragged-lane case; could be folded into the in-kernel
        # tail mask to avoid this whole-array pad copy.
        flat = jnp.concatenate([flat, jnp.zeros((_LANES - rem,), flat.dtype)])
    return flat.reshape(-1, _LANES)


def _pack_small(arrs):
    """Pack the six tiny smooth-L1 operands into one (6, rows, 128) f32 slab."""
    max_n = max(int(a.size) for a in arrs)
    rows = max(1, -(-max_n // _LANES))
    length = rows * _LANES
    slabs = []
    for a in arrs:
        f = jnp.ravel(a).astype(jnp.float32)
        f = jnp.pad(f, (0, length - f.shape[0]))  # zero pad -> contributes 0
        slabs.append(f.reshape(rows, _LANES))
    return jnp.stack(slabs)


def _make_kernel(nblk, block_rows, valid_rows_last,
                 n_off, N_off, n_size, N_size, n_disp, N_disp,
                 R, lambda_size, lambda_offset):
    """Builds the fused Loss_overall kernel with all constants folded in."""
    inv_off = 1.0 / float(n_off * N_off)
    inv_size = 1.0 / float(n_size * N_size)
    inv_disp = 1.0 / float(n_disp * N_disp)
    inv_R = 1.0 / float(R)
    needs_mask = valid_rows_last != block_rows  # static: only the ragged case

    def smooth_l1_sum(p, g):
        d = p - g
        ad = jnp.abs(d)
        return jnp.sum(jnp.where(ad < 1.0, 0.5 * d * d, ad - 0.5))

    def kernel(pk_ref, gk_ref, small_ref, out_ref, acc_ref):
        pid = pl.program_id(0)

        @pl.when(pid == 0)
        def _init():
            acc_ref[0] = 0.0   # focal sum (pos_loss + neg_loss)
            acc_ref[1] = 0.0   # number of keypoints

        def accumulate(pk, gk):
            # ---- Loss_k block contribution (alpha=2, beta=4) ----
            # NOTE: the torch module's print()/torch.unique debug output has no
            # effect on the returned value and is omitted.
            pos = gk == 1.0
            neg = gk < 1.0
            # Single log via select; also keeps padded / masked positions
            # finite (log(1-0)=0) instead of torch's latent -inf*0 NaN hazard.
            log_sel = jnp.log(jnp.where(pos, pk, 1.0 - pk))
            one_m_pk = 1.0 - pk
            one_m_gk = 1.0 - gk
            beta_term = (one_m_gk * one_m_gk) * (one_m_gk * one_m_gk)
            pos_term = one_m_pk * one_m_pk * log_sel
            neg_term = beta_term * (pk * pk) * log_sel
            elem = jnp.where(pos, pos_term, jnp.where(neg, neg_term, 0.0))
            acc_ref[0] = acc_ref[0] + jnp.sum(elem)
            acc_ref[1] = acc_ref[1] + jnp.sum(pos.astype(jnp.float32))

        if needs_mask:
            @pl.when(pid < nblk - 1)
            def _full_blocks():
                accumulate(pk_ref[...].astype(jnp.float32),
                           gk_ref[...].astype(jnp.float32))

            @pl.when(pid == nblk - 1)
            def _ragged_last_block():
                row = jax.lax.broadcasted_iota(
                    jnp.int32, (block_rows, _LANES), 0)
                valid = row < valid_rows_last
                pk = jnp.where(valid, pk_ref[...].astype(jnp.float32), 0.0)
                gk = jnp.where(valid, gk_ref[...].astype(jnp.float32), 0.0)
                accumulate(pk, gk)
        else:
            accumulate(pk_ref[...].astype(jnp.float32),
                       gk_ref[...].astype(jnp.float32))

        @pl.when(pid == nblk - 1)
        def _finalize():
            focal = acc_ref[0]
            num_kp = acc_ref[1]
            l_k = jnp.where(num_kp == 0.0, -focal,
                            -focal / jnp.maximum(num_kp, 1.0))

            # ---- small smooth-L1 losses, computed once on the resident slab ----
            po = small_ref[0]
            kp = small_ref[1]
            ps = small_ref[2]
            gs = small_ref[3]
            pd = small_ref[4]
            gd = small_ref[5]

            kp_r = kp * inv_R
            gt_off = kp_r - jnp.round(kp_r)      # round-half-to-even == torch
            l_off = smooth_l1_sum(po, gt_off) * inv_off
            l_size = smooth_l1_sum(ps, gs) * inv_size
            l_disp = smooth_l1_sum(pd, gd) * inv_disp

            out_ref[0, 0] = (l_k + lambda_size * l_size
                             + lambda_offset * l_off + l_disp)

    return kernel


def loss_overall(pred_k, pred_offset, pred_size, pred_displacement,
                 gt_k, gt_offset, gt_size, gt_displacement,
                 R=4, lambda_size=0.1, lambda_offset=1.0,
                 max_block_rows=2048):
    """Pallas equivalent of Loss_overall.forward (gt_offset == keypoints)."""
    pk = _heatmap_slab(pred_k)
    gk = _heatmap_slab(gt_k)
    rows = pk.shape[0]

    if rows <= max_block_rows:
        block_rows, nblk = rows, 1
    else:
        block_rows = max(_SUBLANES, (max_block_rows // _SUBLANES) * _SUBLANES)
        nblk = -(-rows // block_rows)
    valid_rows_last = rows - (nblk - 1) * block_rows

    small = _pack_small([pred_offset, gt_offset, pred_size, gt_size,
                         pred_displacement, gt_displacement])

    kernel = _make_kernel(
        nblk=nblk, block_rows=block_rows, valid_rows_last=valid_rows_last,
        n_off=int(pred_offset.size), N_off=int(gt_offset.shape[0]),
        n_size=int(pred_size.size), N_size=int(gt_size.shape[0]),
        n_disp=int(pred_displacement.size),
        N_disp=int(gt_displacement.shape[0]),
        R=R, lambda_size=lambda_size, lambda_offset=lambda_offset)

    n_hm = int(pred_k.size)
    hm_bytes = (int(pk.size) * pk.dtype.itemsize
                + int(gk.size) * gk.dtype.itemsize)
    cost = pl.CostEstimate(
        flops=int(15 * n_hm + 8 * small.size),
        transcendentals=int(n_hm),
        bytes_accessed=int(hm_bytes + small.size * 4 + 4))

    out = pl.pallas_call(
        kernel,
        out_shape=jax.ShapeDtypeStruct((1, 1), jnp.float32),
        grid=(nblk,),
        in_specs=[
            pl.BlockSpec((block_rows, _LANES), lambda i: (i, 0)),
            pl.BlockSpec((block_rows, _LANES), lambda i: (i, 0)),
            pl.BlockSpec(small.shape, lambda i: (0, 0, 0)),  # resident, 1 DMA
        ],
        out_specs=pl.BlockSpec(memory_space=pltpu.SMEM),
        scratch_shapes=[pltpu.SMEM((2,), jnp.float32)],
        compiler_params=pltpu.CompilerParams(
            dimension_semantics=("arbitrary",)),
        cost_estimate=cost,
    )(pk, gk, small)
    return out[0, 0]


if __name__ == "__main__":
    key = jax.random.PRNGKey(0)
    k1, k2, k3, k4, k5, k6, k7, k8 = jax.random.split(key, 8)

    B, C, H, W = 2, 3, 24, 24   # 3456 heatmap pixels -> 27 lane-rows of 128
    N = 8                       # number of objects
    R = 4

    # heatmap prediction strictly in (0,1); gt heatmap in [0,0.9] plus a few
    # exact 1.0 keypoint peaks.
    pred_k = jax.nn.sigmoid(jax.random.normal(k1, (B, C, H, W), jnp.float32))
    gt_k = 0.9 * jax.random.uniform(k2, (B, C, H, W), dtype=jnp.float32)
    gt_k = gt_k.at[0, 0, 3, 5].set(1.0)
    gt_k = gt_k.at[0, 1, 10, 12].set(1.0)
    gt_k = gt_k.at[1, 2, 7, 7].set(1.0)

    pred_offset = jax.random.normal(k3, (N, 2), jnp.float32) * 0.5
    keypoints = jax.random.uniform(k4, (N, 2), dtype=jnp.float32) * 64.0
    pred_size = jax.random.normal(k5, (N, 2), jnp.float32) * 2.0
    gt_size = jax.random.normal(k6, (N, 2), jnp.float32) * 2.0
    pred_disp = jax.random.normal(k7, (N, 2), jnp.float32) * 2.0
    gt_disp = jax.random.normal(k8, (N, 2), jnp.float32) * 2.0

    # (a) tiled-reduction path: max_block_rows=8 -> grid=(4,), ragged last
    #     block of 3 valid rows (production default is 2048-row / 1 MiB blocks).
    out_tiled = loss_overall(pred_k, pred_offset, pred_size, pred_disp,
                             gt_k, keypoints, gt_size, gt_disp, R=R,
                             max_block_rows=8)
    out_tiled = jax.block_until_ready(out_tiled)

    # (b) default production block size -> single resident block, grid=(1,).
    out_single = loss_overall(pred_k, pred_offset, pred_size, pred_disp,
                              gt_k, keypoints, gt_size, gt_disp, R=R)
    out_single = jax.block_until_ready(out_single)

    # ---- pure-JAX reference of the PyTorch module ----
    def smooth_l1_mean(p, g):
        d = p - g
        ad = jnp.abs(d)
        return jnp.mean(jnp.where(ad < 1.0, 0.5 * d * d, ad - 0.5))

    pos = (gt_k == 1.0).astype(jnp.float32)
    neg = (gt_k < 1.0).astype(jnp.float32)
    pos_loss = jnp.sum((1.0 - pred_k) ** 2 * jnp.log(pred_k) * pos)
    neg_loss = jnp.sum((1.0 - gt_k) ** 4 * pred_k ** 2
                       * jnp.log(1.0 - pred_k) * neg)
    nkp = jnp.sum(pos)
    l_k_ref = jnp.where(nkp == 0, -neg_loss,
                        -(neg_loss + pos_loss) / jnp.maximum(nkp, 1.0))
    l_size_ref = smooth_l1_mean(pred_size, gt_size) / N
    gt_off_ref = keypoints / R - jnp.round(keypoints / R)
    l_off_ref = smooth_l1_mean(pred_offset, gt_off_ref) / N
    l_disp_ref = smooth_l1_mean(pred_disp, gt_disp) / N
    ref = l_k_ref + 0.1 * l_size_ref + 1.0 * l_off_ref + l_disp_ref

    assert jnp.allclose(out_tiled, ref, rtol=1e-4, atol=1e-5), (out_tiled, ref)
    assert jnp.allclose(out_single, ref, rtol=1e-4, atol=1e-5), (out_single, ref)
    print("KERNEL_OK")
</pallas_src>

<mosaic_0001>
module attributes {stable_mosaic.version = 11 : i64} {
  func.func @kernel(%arg0: i32, %arg1: memref<8x128xf32, #tpu.memory_space<vmem>>, %arg2: memref<8x128xf32, #tpu.memory_space<vmem>>, %arg3: memref<6x1x128xf32, #tpu.memory_space<vmem>>, %arg4: memref<1x1xf32, #tpu.memory_space<smem>>, %arg5: memref<2xf32, #tpu.memory_space<smem>>) attributes {dimension_semantics = [#tpu.dimension_semantics<arbitrary>], iteration_bounds = array<i64: 4>, scalar_prefetch = 0 : i64, scratch_operands = 1 : i64, tpu.core_type = #tpu.core_type<tc>, window_params = [{transform_indices = @transform_0, window_bounds = array<i64: 8, 128>}, {transform_indices = @transform_1, window_bounds = array<i64: 8, 128>}, {pipeline_mode = #tpu.pipeline_mode<synchronous>, transform_indices = @transform_2, window_bounds = array<i64: 6, 1, 128>}, {transform_indices = @transform_3, window_bounds = array<i64: 1, 1>}]} {
    %c0_i32 = arith.constant 0 : i32
    %0 = arith.cmpi eq, %arg0, %c0_i32 : i32
    %1 = arith.extui %0 : i1 to i32
    %c0_i32_0 = arith.constant 0 : i32
    %2 = arith.cmpi ne, %1, %c0_i32_0 : i32
    scf.if %2 {
      %cst = arith.constant 0.000000e+00 : f32
      %c0 = arith.constant 0 : index
      %12 = memref.load %arg5[%c0] : memref<2xf32, #tpu.memory_space<smem>>
      memref.store %cst, %arg5[%c0] : memref<2xf32, #tpu.memory_space<smem>>
      %cst_6 = arith.constant 0.000000e+00 : f32
      %c1 = arith.constant 1 : index
      %13 = memref.load %arg5[%c1] : memref<2xf32, #tpu.memory_space<smem>>
      memref.store %cst_6, %arg5[%c1] : memref<2xf32, #tpu.memory_space<smem>>
    } else {
    }
    %c3_i32 = arith.constant 3 : i32
    %3 = arith.cmpi slt, %arg0, %c3_i32 : i32
    %4 = arith.extui %3 : i1 to i32
    %c0_i32_1 = arith.constant 0 : i32
    %5 = arith.cmpi ne, %4, %c0_i32_1 : i32
    scf.if %5 {
      %c0 = arith.constant 0 : index
      %c0_6 = arith.constant 0 : index
      %12 = vector.load %arg1[%c0, %c0_6] : memref<8x128xf32, #tpu.memory_space<vmem>>, vector<8x128xf32>
      %c0_7 = arith.constant 0 : index
      %c0_8 = arith.constant 0 : index
      %13 = vector.load %arg2[%c0_7, %c0_8] : memref<8x128xf32, #tpu.memory_space<vmem>>, vector<8x128xf32>
      %cst = arith.constant 1.000000e+00 : f32
      %14 = vector.broadcast %cst : f32 to vector<8x128xf32>
      %15 = arith.cmpf oeq, %13, %14 : vector<8x128xf32>
      %cst_9 = arith.constant 1.000000e+00 : f32
      %16 = vector.broadcast %cst_9 : f32 to vector<8x128xf32>
      %17 = arith.cmpf olt, %13, %16 : vector<8x128xf32>
      %cst_10 = arith.constant 1.000000e+00 : f32
      %18 = vector.broadcast %cst_10 : f32 to vector<8x128xf32>
      %19 = arith.subf %18, %12 : vector<8x128xf32>
      %20 = arith.select %15, %12, %19 : vector<8x128xi1>, vector<8x128xf32>
      %21 = math.log %20 : vector<8x128xf32>
      %cst_11 = arith.constant 1.000000e+00 : f32
      %22 = vector.broadcast %cst_11 : f32 to vector<8x128xf32>
      %23 = arith.subf %22, %12 : vector<8x128xf32>
      %cst_12 = arith.constant 1.000000e+00 : f32
      %24 = vector.broadcast %cst_12 : f32 to vector<8x128xf32>
      %25 = arith.subf %24, %13 : vector<8x128xf32>
      %26 = arith.mulf %25, %25 : vector<8x128xf32>
      %27 = arith.mulf %25, %25 : vector<8x128xf32>
      %28 = arith.mulf %26, %27 : vector<8x128xf32>
      %29 = arith.mulf %23, %23 : vector<8x128xf32>
      %30 = arith.mulf %29, %21 : vector<8x128xf32>
      %31 = arith.mulf %12, %12 : vector<8x128xf32>
      %32 = arith.mulf %28, %31 : vector<8x128xf32>
      %33 = arith.mulf %32, %21 : vector<8x128xf32>
      %cst_13 = arith.constant 0.000000e+00 : f32
      %34 = vector.broadcast %cst_13 : f32 to vector<8x128xf32>
      %35 = arith.select %17, %33, %34 : vector<8x128xi1>, vector<8x128xf32>
      %36 = arith.select %15, %30, %35 : vector<8x128xi1>, vector<8x128xf32>
      %c0_14 = arith.constant 0 : index
      %37 = memref.load %arg5[%c0_14] : memref<2xf32, #tpu.memory_space<smem>>
      %38 = vector.shape_cast %36 : vector<8x128xf32> to vector<1x8x128xf32>
      %cst_15 = arith.constant dense<0.000000e+00> : vector<1xf32>
      %39 = vector.multi_reduction <add>, %38, %cst_15 [1, 2] : vector<1x8x128xf32> to vector<1xf32>
      %40 = vector.shape_cast %39 : vector<1xf32> to vector<1x1x1xf32>
      %41 = vector.extract %40[0, 0, 0] : f32 from vector<1x1x1xf32>
      %42 = arith.addf %37, %41 : f32
      %c0_16 = arith.constant 0 : index
      %43 = memref.load %arg5[%c0_16] : memref<2xf32, #tpu.memory_space<smem>>
      memref.store %42, %arg5[%c0_16] : memref<2xf32, #tpu.memory_space<smem>>
      %c1 = arith.constant 1 : index
      %44 = memref.load %arg5[%c1] : memref<2xf32, #tpu.memory_space<smem>>
      %45 = arith.extui %15 : vector<8x128xi1> to vector<8x128xi32>
      %46 = arith.sitofp %45 : vector<8x128xi32> to vector<8x128xf32>
      %47 = vector.shape_cast %46 : vector<8x128xf32> to vector<1x8x128xf32>
      %cst_17 = arith.constant dense<0.000000e+00> : vector<1xf32>
      %48 = vector.multi_reduction <add>, %47, %cst_17 [1, 2] : vector<1x8x128xf32> to vector<1xf32>
      %49 = vector.shape_cast %48 : vector<1xf32> to vector<1x1x1xf32>
      %50 = vector.extract %49[0, 0, 0] : f32 from vector<1x1x1xf32>
      %51 = arith.addf %44, %50 : f32
      %c1_18 = arith.constant 1 : index
      %52 = memref.load %arg5[%c1_18] : memref<2xf32, #tpu.memory_space<smem>>
      memref.store %51, %arg5[%c1_18] : memref<2xf32, #tpu.memory_space<smem>>
    } else {
    }
    %c3_i32_2 = arith.constant 3 : i32
    %6 = arith.cmpi eq, %arg0, %c3_i32_2 : i32
    %7 = arith.extui %6 : i1 to i32
    %c0_i32_3 = arith.constant 0 : i32
    %8 = arith.cmpi ne, %7, %c0_i32_3 : i32
    scf.if %8 {
      %12 = tpu.iota {dimensions = array<i32: 0>} : vector<8x128xi32>
      %c3_i32_6 = arith.constant 3 : i32
      %13 = vector.broadcast %c3_i32_6 : i32 to vector<8x128xi32>
      %14 = arith.cmpi slt, %12, %13 : vector<8x128xi32>
      %c0 = arith.constant 0 : index
      %c0_7 = arith.constant 0 : index
      %15 = vector.load %arg1[%c0, %c0_7] : memref<8x128xf32, #tpu.memory_space<vmem>>, vector<8x128xf32>
      %cst = arith.constant 0.000000e+00 : f32
      %16 = vector.broadcast %cst : f32 to vector<8x128xf32>
      %17 = arith.select %14, %15, %16 : vector<8x128xi1>, vector<8x128xf32>
      %c0_8 = arith.constant 0 : index
      %c0_9 = arith.constant 0 : index
      %18 = vector.load %arg2[%c0_8, %c0_9] : memref<8x128xf32, #tpu.memory_space<vmem>>, vector<8x128xf32>
      %cst_10 = arith.constant 0.000000e+00 : f32
      %19 = vector.broadcast %cst_10 : f32 to vector<8x128xf32>
      %20 = arith.select %14, %18, %19 : vector<8x128xi1>, vector<8x128xf32>
      %cst_11 = arith.constant 1.000000e+00 : f32
      %21 = vector.broadcast %cst_11 : f32 to vector<8x128xf32>
      %22 = arith.cmpf oeq, %20, %21 : vector<8x128xf32>
      %cst_12 = arith.constant 1.000000e+00 : f32
      %23 = vector.broadcast %cst_12 : f32 to vector<8x128xf32>
      %24 = arith.cmpf olt, %20, %23 : vector<8x128xf32>
      %cst_13 = arith.constant 1.000000e+00 : f32
      %25 = vector.broadcast %cst_13 : f32 to vector<8x128xf32>
      %26 = arith.subf %25, %17 : vector<8x128xf32>
      %27 = arith.select %22, %17, %26 : vector<8x128xi1>, vector<8x128xf32>
      %28 = math.log %27 : vector<8x128xf32>
      %cst_14 = arith.constant 1.000000e+00 : f32
      %29 = vector.broadcast %cst_14 : f32 to vector<8x128xf32>
      %30 = arith.subf %29, %17 : vector<8x128xf32>
      %cst_15 = arith.constant 1.000000e+00 : f32
      %31 = vector.broadcast %cst_15 : f32 to vector<8x128xf32>
      %32 = arith.subf %31, %20 : vector<8x128xf32>
      %33 = arith.mulf %32, %32 : vector<8x128xf32>
      %34 = arith.mulf %32, %32 : vector<8x128xf32>
      %35 = arith.mulf %33, %34 : vector<8x128xf32>
      %36 = arith.mulf %30, %30 : vector<8x128xf32>
      %37 = arith.mulf %36, %28 : vector<8x128xf32>
      %38 = arith.mulf %17, %17 : vector<8x128xf32>
      %39 = arith.mulf %35, %38 : vector<8x128xf32>
      %40 = arith.mulf %39, %28 : vector<8x128xf32>
      %cst_16 = arith.constant 0.000000e+00 : f32
      %41 = vector.broadcast %cst_16 : f32 to vector<8x128xf32>
      %42 = arith.select %24, %40, %41 : vector<8x128xi1>, vector<8x128xf32>
      %43 = arith.select %22, %37, %42 : vector<8x128xi1>, vector<8x128xf32>
      %c0_17 = arith.constant 0 : index
      %44 = memref.load %arg5[%c0_17] : memref<2xf32, #tpu.memory_space<smem>>
      %45 = vector.shape_cast %43 : vector<8x128xf32> to vector<1x8x128xf32>
      %cst_18 = arith.constant dense<0.000000e+00> : vector<1xf32>
      %46 = vector.multi_reduction <add>, %45, %cst_18 [1, 2] : vector<1x8x128xf32> to vector<1xf32>
      %47 = vector.shape_cast %46 : vector<1xf32> to vector<1x1x1xf32>
      %48 = vector.extract %47[0, 0, 0] : f32 from vector<1x1x1xf32>
      %49 = arith.addf %44, %48 : f32
      %c0_19 = arith.constant 0 : index
      %50 = memref.load %arg5[%c0_19] : memref<2xf32, #tpu.memory_space<smem>>
      memref.store %49, %arg5[%c0_19] : memref<2xf32, #tpu.memory_space<smem>>
      %c1 = arith.constant 1 : index
      %51 = memref.load %arg5[%c1] : memref<2xf32, #tpu.memory_space<smem>>
      %52 = arith.extui %22 : vector<8x128xi1> to vector<8x128xi32>
      %53 = arith.sitofp %52 : vector<8x128xi32> to vector<8x128xf32>
      %54 = vector.shape_cast %53 : vector<8x128xf32> to vector<1x8x128xf32>
      %cst_20 = arith.constant dense<0.000000e+00> : vector<1xf32>
      %55 = vector.multi_reduction <add>, %54, %cst_20 [1, 2] : vector<1x8x128xf32> to vector<1xf32>
      %56 = vector.shape_cast %55 : vector<1xf32> to vector<1x1x1xf32>
      %57 = vector.extract %56[0, 0, 0] : f32 from vector<1x1x1xf32>
      %58 = arith.addf %51, %57 : f32
      %c1_21 = arith.constant 1 : index
      %59 = memref.load %arg5[%c1_21] : memref<2xf32, #tpu.memory_space<smem>>
      memref.store %58, %arg5[%c1_21] : memref<2xf32, #tpu.memory_space<smem>>
    } else {
    }
    %c3_i32_4 = arith.constant 3 : i32
    %9 = arith.cmpi eq, %arg0, %c3_i32_4 : i32
    %10 = arith.extui %9 : i1 to i32
    %c0_i32_5 = arith.constant 0 : i32
    %11 = arith.cmpi ne, %10, %c0_i32_5 : i32
    scf.if %11 {
      %c0 = arith.constant 0 : index
      %12 = memref.load %arg5[%c0] : memref<2xf32, #tpu.memory_space<smem>>
      %c1 = arith.constant 1 : index
      %13 = memref.load %arg5[%c1] : memref<2xf32, #tpu.memory_space<smem>>
      %cst = arith.constant 0.000000e+00 : f32
      %14 = arith.cmpf oeq, %13, %cst : f32
      %cst_6 = arith.constant 0.000000e+00 : f32
      %15 = arith.subf %cst_6, %12 : f32
      %cst_7 = arith.constant 0.000000e+00 : f32
      %16 = arith.subf %cst_7, %12 : f32
      %cst_8 = arith.constant 1.000000e+00 : f32
      %17 = arith.maximumf %13, %cst_8 : f32
      %18 = arith.divf %16, %17 : f32
      %19 = arith.select %14, %15, %18 : f32
      %c0_9 = arith.constant 0 : index
      %c0_10 = arith.constant 0 : index
      %c0_11 = arith.constant 0 : index
      %20 = vector.load %arg3[%c0_9, %c0_10, %c0_11] : memref<6x1x128xf32, #tpu.memory_space<vmem>>, vector<1x1x128xf32>
      %21 = vector.shape_cast %20 : vector<1x1x128xf32> to vector<1x128xf32>
      %c1_12 = arith.constant 1 : index
      %c0_13 = arith.constant 0 : index
      %c0_14 = arith.constant 0 : index
      %22 = vector.load %arg3[%c1_12, %c0_13, %c0_14] : memref<6x1x128xf32, #tpu.memory_space<vmem>>, vector<1x1x128xf32>
      %23 = vector.shape_cast %22 : vector<1x1x128xf32> to vector<1x128xf32>
      %c2 = arith.constant 2 : index
      %c0_15 = arith.constant 0 : index
      %c0_16 = arith.constant 0 : index
      %24 = vector.load %arg3[%c2, %c0_15, %c0_16] : memref<6x1x128xf32, #tpu.memory_space<vmem>>, vector<1x1x128xf32>
      %25 = vector.shape_cast %24 : vector<1x1x128xf32> to vector<1x128xf32>
      %c3 = arith.constant 3 : index
      %c0_17 = arith.constant 0 : index
      %c0_18 = arith.constant 0 : index
      %26 = vector.load %arg3[%c3, %c0_17, %c0_18] : memref<6x1x128xf32, #tpu.memory_space<vmem>>, vector<1x1x128xf32>
      %27 = vector.shape_cast %26 : vector<1x1x128xf32> to vector<1x128xf32>
      %c4 = arith.constant 4 : index
      %c0_19 = arith.constant 0 : index
      %c0_20 = arith.constant 0 : index
      %28 = vector.load %arg3[%c4, %c0_19, %c0_20] : memref<6x1x128xf32, #tpu.memory_space<vmem>>, vector<1x1x128xf32>
      %29 = vector.shape_cast %28 : vector<1x1x128xf32> to vector<1x128xf32>
      %c5 = arith.constant 5 : index
      %c0_21 = arith.constant 0 : index
      %c0_22 = arith.constant 0 : index
      %30 = vector.load %arg3[%c5, %c0_21, %c0_22] : memref<6x1x128xf32, #tpu.memory_space<vmem>>, vector<1x1x128xf32>
      %31 = vector.shape_cast %30 : vector<1x1x128xf32> to vector<1x128xf32>
      %cst_23 = arith.constant 2.500000e-01 : f32
      %32 = vector.broadcast %cst_23 : f32 to vector<1x128xf32>
      %33 = arith.mulf %23, %32 : vector<1x128xf32>
      %34 = math.roundeven %33 : vector<1x128xf32>
      %35 = arith.subf %33, %34 : vector<1x128xf32>
      %36 = arith.subf %21, %35 : vector<1x128xf32>
      %37 = math.absf %36 : vector<1x128xf32>
      %cst_24 = arith.constant 1.000000e+00 : f32
      %38 = vector.broadcast %cst_24 : f32 to vector<1x128xf32>
      %39 = arith.cmpf olt, %37, %38 : vector<1x128xf32>
      %cst_25 = arith.constant 5.000000e-01 : f32
      %40 = vector.broadcast %cst_25 : f32 to vector<1x128xf32>
      %41 = arith.mulf %40, %36 : vector<1x128xf32>
      %42 = arith.mulf %41, %36 : vector<1x128xf32>
      %cst_26 = arith.constant 5.000000e-01 : f32
      %43 = vector.broadcast %cst_26 : f32 to vector<1x128xf32>
      %44 = arith.subf %37, %43 : vector<1x128xf32>
      %45 = arith.select %39, %42, %44 : vector<1x128xi1>, vector<1x128xf32>
      %46 = vector.shape_cast %45 : vector<1x128xf32> to vector<1x1x128xf32>
      %cst_27 = arith.constant dense<0.000000e+00> : vector<1xf32>
      %47 = vector.multi_reduction <add>, %46, %cst_27 [1, 2] : vector<1x1x128xf32> to vector<1xf32>
      %48 = vector.shape_cast %47 : vector<1xf32> to vector<1x1x1xf32>
      %49 = vector.extract %48[0, 0, 0] : f32 from vector<1x1x1xf32>
      %cst_28 = arith.constant 7.812500e-03 : f32
      %50 = arith.mulf %49, %cst_28 : f32
      %51 = arith.subf %25, %27 : vector<1x128xf32>
      %52 = math.absf %51 : vector<1x128xf32>
      %cst_29 = arith.constant 1.000000e+00 : f32
      %53 = vector.broadcast %cst_29 : f32 to vector<1x128xf32>
      %54 = arith.cmpf olt, %52, %53 : vector<1x128xf32>
      %cst_30 = arith.constant 5.000000e-01 : f32
      %55 = vector.broadcast %cst_30 : f32 to vector<1x128xf32>
      %56 = arith.mulf %55, %51 : vector<1x128xf32>
      %57 = arith.mulf %56, %51 : vector<1x128xf32>
      %cst_31 = arith.constant 5.000000e-01 : f32
      %58 = vector.broadcast %cst_31 : f32 to vector<1x128xf32>
      %59 = arith.subf %52, %58 : vector<1x128xf32>
      %60 = arith.select %54, %57, %59 : vector<1x128xi1>, vector<1x128xf32>
      %61 = vector.shape_cast %60 : vector<1x128xf32> to vector<1x1x128xf32>
      %cst_32 = arith.constant dense<0.000000e+00> : vector<1xf32>
      %62 = vector.multi_reduction <add>, %61, %cst_32 [1, 2] : vector<1x1x128xf32> to vector<1xf32>
      %63 = vector.shape_cast %62 : vector<1xf32> to vector<1x1x1xf32>
      %64 = vector.extract %63[0, 0, 0] : f32 from vector<1x1x1xf32>
      %cst_33 = arith.constant 7.812500e-03 : f32
      %65 = arith.mulf %64, %cst_33 : f32
      %66 = arith.subf %29, %31 : vector<1x128xf32>
      %67 = math.absf %66 : vector<1x128xf32>
      %cst_34 = arith.constant 1.000000e+00 : f32
      %68 = vector.broadcast %cst_34 : f32 to vector<1x128xf32>
      %69 = arith.cmpf olt, %67, %68 : vector<1x128xf32>
      %cst_35 = arith.constant 5.000000e-01 : f32
      %70 = vector.broadcast %cst_35 : f32 to vector<1x128xf32>
      %71 = arith.mulf %70, %66 : vector<1x128xf32>
      %72 = arith.mulf %71, %66 : vector<1x128xf32>
      %cst_36 = arith.constant 5.000000e-01 : f32
      %73 = vector.broadcast %cst_36 : f32 to vector<1x128xf32>
      %74 = arith.subf %67, %73 : vector<1x128xf32>
      %75 = arith.select %69, %72, %74 : vector<1x128xi1>, vector<1x128xf32>
      %76 = vector.shape_cast %75 : vector<1x128xf32> to vector<1x1x128xf32>
      %cst_37 = arith.constant dense<0.000000e+00> : vector<1xf32>
      %77 = vector.multi_reduction <add>, %76, %cst_37 [1, 2] : vector<1x1x128xf32> to vector<1xf32>
      %78 = vector.shape_cast %77 : vector<1xf32> to vector<1x1x1xf32>
      %79 = vector.extract %78[0, 0, 0] : f32 from vector<1x1x1xf32>
      %cst_38 = arith.constant 7.812500e-03 : f32
      %80 = arith.mulf %79, %cst_38 : f32
      %cst_39 = arith.constant 1.000000e-01 : f32
      %81 = arith.mulf %cst_39, %65 : f32
      %82 = arith.addf %19, %81 : f32
      %cst_40 = arith.constant 1.000000e+00 : f32
      %83 = arith.mulf %cst_40, %50 : f32
      %84 = arith.addf %82, %83 : f32
      %85 = arith.addf %84, %80 : f32
      %c0_41 = arith.constant 0 : index
      %c0_42 = arith.constant 0 : index
      %86 = memref.load %arg4[%c0_41, %c0_42] : memref<1x1xf32, #tpu.memory_space<smem>>
      memref.store %85, %arg4[%c0_41, %c0_42] : memref<1x1xf32, #tpu.memory_space<smem>>
    } else {
    }
    return
  }
  func.func @transform_0(%arg0: i32) -> (i32, i32) {
    %c0_i32 = arith.constant 0 : i32
    %c0_i32_0 = arith.constant 0 : i32
    return %arg0, %c0_i32 : i32, i32
  }
  func.func @transform_1(%arg0: i32) -> (i32, i32) {
    %c0_i32 = arith.constant 0 : i32
    %c0_i32_0 = arith.constant 0 : i32
    return %arg0, %c0_i32 : i32, i32
  }
  func.func @transform_2(%arg0: i32) -> (i32, i32, i32) {
    %c0_i32 = arith.constant 0 : i32
    %c0_i32_0 = arith.constant 0 : i32
    %c0_i32_1 = arith.constant 0 : i32
    %c0_i32_2 = arith.constant 0 : i32
    return %c0_i32, %c0_i32_0, %c0_i32_1 : i32, i32, i32
  }
  func.func @transform_3(%arg0: i32) -> (i32, i32) {
    %c0_i32 = arith.constant 0 : i32
    %c0_i32_0 = arith.constant 0 : i32
    %c0_i32_1 = arith.constant 0 : i32
    return %c0_i32, %c0_i32_0 : i32, i32
  }
}

</mosaic_0001>

<bundles_post_ra>
// kernel: tpu_custom_call.1
= control target key start
LH: loop header
LB: loop body
LE: loop exit
PB: predicated region body
PF: predicated region fallthrough
CT: control target
= control target key end

     0   :  { %8 = vsyncpa [#allocation4], 0  ;;  %s1006_s0 = inlined_call_operand.hbm [shape: f32[27,128], index: 0, kind: input, shape index: {}]   ;;  %s1007_s1 = inlined_call_operand.hbm [shape: f32[27,128], index: 1, kind: input, shape index: {}]   ;;  %s1008_s2 = inlined_call_operand.hbm [shape: f32[6,1,128], index: 2, kind: input, shape index: {}]   ;;  %s1009_s3 = inlined_call_operand.hbm [shape: f32[1,1], index: 3, kind: output, shape index: {}]  }
   0x1   :  { %10 = vsyncpa [#allocation4 + $0x1], 0 }
   0x2   :  { %11 = vsyncpa [#allocation7], 0 }
   0x3   :  { %13 = vsyncpa [#allocation7 + $0x1], 0 }
   0x4   :  { %14 = vsyncpa [#allocation5], 0  ;;  %s841_s12 = smov 0   ;;  %s843_s13 = smov 0  }
   0x5   :  { %s845_s14 = smov 0   ;;  %s847_s15 = smov 0  }
   0x6 LB: > { %s130_s18 = sshll.u32 %s1008_s2, 4  ;;  %s863_s19 = sadd.s32 4294967295, %s811_s15   ;;  %s811_s15 = sphi %s847_s15, %s1016_s15   ;;  %s807_s14 = sphi %s845_s14, %s1015_s14   ;;  %s803_s13 = sphi %s843_s13, %s1014_s13   ;;  %s799_s12 = sphi %s841_s12, %s1013_s12   ;;  %s131_s18 = int_to_ptr.hbm [resolvable:$true] %s130_s18 }
   0x7   : > { %p533_p0 = scmp.ge.s32.totalorder %s811_s15, 1  ;;  %p41_p1 = scmp.eq.s32.totalorder %s863_s19, 0 }
   0x8   : > { %p119_p2 = scmp.lt.s32.totalorder %s811_s15, 5  ;;  %s813_s21 = smov [#allocation8]  }
   0x9   : > { %s132_s22 = sshll.u32 %s813_s21, 4  ;;  %s814_s23 = smov 16   ;;  %s133_s22 = int_to_ptr.vmem [resolvable:$true] %s132_s22 }
   0xa   : > { %p868_p3 = pnand %p533_p0, %p119_p2  ;;  %s815_s24 = smov 1  }
   0xb   : > { %s877_s25 = sadd.s32 1, %s811_s15   ;;  %s27_s27 = sadd.s32 1, %s807_s14 }
   0xc   : > { %p598_p4 = pneg %p868_p3  ;;  %s24_s26 = ssub.s32 %s811_s15, %s877_s25 }
   0xd   : > { %p25_p6 = scmp.eq.s32.totalorder %s24_s26, 0  ;;  %p34_p7 = scmp.ne.s32.totalorder %s807_s14, %s803_s13 }
   0xe   : > { %p599_p5 = pnand %p598_p4, %p41_p1  ;;  %p35_p8 = scmp.eq.s32.totalorder %s811_s15, 0 }
   0xf   : > { %p40_p9 = scmp.ne.s32.totalorder %s803_s13, %s799_s12  ;;  %p610_p12 = scmp.lt.s32.totalorder %s811_s15, 4 }
  0x10   : > { %601 = dma.hbm_to_vmem [thread:$0]  (!%p599_p5), %s131_s18, 96, %s133_s22, [#allocation7], %s814_s23, %s814_s23, %s815_s24  }
  0x11   : > { %s887_s28 = scalar_select %p25_p6, %s807_s14, %s27_s27  }
  0x12   : > { %p36_p10 = por %p35_p8, %p34_p7  ;;  %p891_p11 = por %p41_p1, %p40_p9 }
  0x13   : > { %s146_s30 = sand.u32 1, %s807_s14   ;;  %s537_s5 = sshll.u32 %s811_s15, 3 }
  0x14   : > { %s897_s4 = sshll.u32 %s146_s30, 3  ;;  %s154_s8 = scalar_lea.hbm %s1006_s0, %s537_s5 }
  0x15   : > { %s150_s9 = scalar_lea.vmem [#allocation3], %s897_s4  ;;  %s156_s11 = sshll.u32 %s154_s8, 4  ;;  %s157_s11 = int_to_ptr.hbm [resolvable:$true] %s156_s11 }
  0x16   : > { %s158_s10 = sshll.u32 %s150_s9, 4  ;;  %p904_p13 = pnand %p610_p12, %p36_p10  ;;  %s159_s10 = int_to_ptr.vmem [resolvable:$true] %s158_s10 }
  0x17   : > { %s173_s18 = scalar_lea.hbm %s1007_s1, %s537_s5  ;;  %s165_s21 = sand.u32 1, %s811_s15  }
  0x18   : > { %s147_s22 = scalar_lea.sflag [#allocation4], %s146_s30  ;;  %s691_s23 = sshra.s32 %s157_s11, 4  ;;  %s692_s23 = int_to_ptr.hbm [resolvable:$true] %s691_s23 }
  0x19   : > { %s693_s24 = scalar_lea.hbm %s692_s23, 8  ;;  %p695_p2 = pneg %p904_p13 }
  0x1a   : > { %p694_p0 = scmp.ne.s32.totalorder %s692_s23, %s693_s24  ;;  %s698_s6 = scalar_lea.hbm %s1006_s0, 32 }
  0x1b   : > { %p699_p6 = scmp.lt.s32.totalorder %s692_s23, %s1006_s0  ;;  %p700_p7 = scmp.lt.s32.totalorder %s698_s6, %s693_s24 }
  0x1c   : > { %p696_p4 = pnand %p695_p2, %p694_p0 }
  0x1d   : > { %p701_p8 = por %p700_p7, %p699_p6 }
  0x1e   : > { %p697_p5 = pneg %p696_p4 }
  0x20   : > { %p702_p9 = pnand %p701_p8, %p697_p5 }
  0x22   : > { %705 = shalt.err (!%p702_p9)
}
  0x23   : > { %605 = dma.hbm_to_vmem [thread:$0]  (!%p904_p13), %s157_s11, 128, %s159_s10, %s147_s22  }
  0x24   : > { %s175_s15 = sshll.u32 %s173_s18, 4  ;;  %s169_s30 = scalar_lea.vmem [#allocation6], %s897_s4  ;;  %s176_s15 = int_to_ptr.hbm [resolvable:$true] %s175_s15 }
  0x25   : > { %s177_s5 = sshll.u32 %s169_s30, 4  ;;  %s166_s9 = scalar_lea.sflag [#allocation7], %s165_s21  ;;  %s178_s5 = int_to_ptr.vmem [resolvable:$true] %s177_s5 }
  0x26   : > { %s721_s16 = sshra.s32 %s176_s15, 4  ;;  %s728_s26 = scalar_lea.hbm %s1007_s1, 32  ;;  %s722_s16 = int_to_ptr.hbm [resolvable:$true] %s721_s16 }
  0x27   : > { %s723_s17 = scalar_lea.hbm %s722_s16, 8  ;;  %p729_p4 = scmp.lt.s32.totalorder %s722_s16, %s1007_s1 }
  0x28   : > { %p724_p10 = scmp.ne.s32.totalorder %s722_s16, %s723_s17  ;;  %p730_p5 = scmp.lt.s32.totalorder %s728_s26, %s723_s17 }
  0x2a   : > { %p726_p12 = pnand %p724_p10, %p695_p2  ;;  %p731_p6 = por %p730_p5, %p729_p4 }
  0x2c   : > { %p727_p0 = pneg %p726_p12 }
  0x2e   : > { %p732_p7 = pnand %p731_p6, %p727_p0 }
  0x30   : > { %735 = shalt.err (!%p732_p7)
}
  0x31   : > { %608 = dma.hbm_to_vmem [thread:$0]  (!%p904_p13), %s176_s15, 128, %s178_s5, %s166_s9  }
  0x32   : > { %186 = sbr.rel (%p868_p3) target bundleno = 579 (0x243), region = 32  ;;  %s188_s4 = sand.u32 (!%p868_p3), 1, %s803_s13  }
  0x33   : > { %s940_s11 = sshll.u32 (!%p868_p3), %s188_s4, 3  ;;  %s189_s18 = scalar_lea.sflag (!%p868_p3), [#allocation4], %s188_s4 }
  0x34   : > { %s192_s21 = scalar_lea.vmem (!%p868_p3), [#allocation3], %s940_s11 }
  0x37   : > { %782 = dma.done.wait (%p891_p11), %s189_s18, 128  }
  0x38   : > { %784 = vsyncadd (%p891_p11), %s189_s18, 4294967168  ;;  %s198_s12 = sand.u32 1, %s863_s19   ;;  %s202_s20 = scalar_lea.vmem [#allocation6], %s940_s11 }
  0x39   : > { %s199_s22 = scalar_lea.sflag [#allocation7], %s198_s12 }
  0x3a   : > { %786 = dma.done.wait (%p891_p11), %s199_s22, 128  }
  0x3b   : > { %788 = vsyncadd (%p891_p11), %s199_s22, 4294967168 }
  0x3c   : > { %790 = dma.done.wait (%p41_p1), [#allocation7], 96  }
  0x3d   : > { %792 = vsyncadd (%p41_p1), [#allocation7], 4294967200  ;;  %s816_s6 = smov 0.0   ;;  %p545_p3 = scmp.ge.s32.totalorder %s863_s19, 3 }
  0x3e   : > { %592 = sst [smem:[#allocation2]] (%p41_p1), %s816_s6 }
  0x3f   : > { %593 = sst [smem:[#allocation2 + $0x1]] (%p41_p1), %s816_s6  ;;  %242 = sbr.rel (%p545_p3) target bundleno = 274 (0x112), region = 52 }
  0x40   : > { %s261_s29 = sld [smem:[#allocation2]] (!%p545_p3) }
  0x41   : > { %s546_s8 = sld [smem:[#allocation2 + $0x1]] (!%p545_p3) }
  0x44   : > { %v243_v0 = vld [vmem:[%s192_s21] sm:$0xff]  ;;  %v244_v1 = vld [vmem:[%s202_s20] sm:$0xff]  ;;  %v817_v16 = vmov 0.0  }
  0x45   : > { %vm245_vm0 = vcmp.eq.f32.partialorder %v244_v1, 1.0  ;;  %v247_v2 = vsub.f32 1.0, %v243_v0  ;;  %v251_v3 = vsub.f32 1.0, %v244_v1  ;;  %v256_v7 = vmul.f32 %v243_v0, %v243_v0 }
  0x46   : > { %vm246_vm1 = vcmp.lt.f32.partialorder %v244_v1, 1.0  ;;  %v547_v17 = vsel %vm245_vm0, 1.0, %v817_v16 }
  0x47   : > { %v248_v4 = vsel %vm245_vm0, %v243_v0, %v247_v2  ;;  %v252_v5 = vmul.f32 %v251_v3, %v251_v3  ;;  %v254_v8 = vmul.f32 %v247_v2, %v247_v2 }
  0x48   : > { %655 = vlog2.f32 %v248_v4 }
  0x49   : > { %v253_v6 = vmul.f32 %v252_v5, %v252_v5 }
  0x4b   : > { %v257_v9 = vmul.f32 %v256_v7, %v253_v6 }
  0x4e   : > { %v656_v10 = vpop.eup %655 }
  0x4f   : > { %v250_v11 = vmul.f32 0.6931472, %v656_v10 }
  0x51   : > { %v255_v12 = vmul.f32 %v254_v8, %v250_v11  ;;  %v258_v13 = vmul.f32 %v257_v9, %v250_v11 }
  0x53   : > { %v259_v14 = vsel %vm246_vm1, %v258_v13, 0.0 }
  0x54   : > { %v260_v15 = vsel %vm245_vm0, %v255_v12, %v259_v14 }
  0x55   : > { %262 = vadd.xlane.f32.xlu0 %v260_v15 }
  0x5d   : > { %277 = vadd.xlane.f32.xlu0 %v547_v17 }
  0xc8   : > { %v263_v18 = vpop.xlane.xlu0 %262 }
  0xc9   : > { %v264_v19 = vrot.slane %v263_v18, 4 }
  0xcb   : > { %v265_v20 = vadd.f32 %v264_v19, %v263_v18 }
  0xcd   : > { %v266_v21 = vrot.slane %v265_v20, 2 }
  0xcf   : > { %v267_v22 = vadd.f32 %v266_v21, %v265_v20 }
  0xd0   : > { %v278_v23 = vpop.xlane.xlu0 %277 }
  0xd1   : > { %v279_v24 = vrot.slane %v278_v23, 4  ;;  %v268_v25 = vrot.slane %v267_v22, 1 }
  0xd3   : > { %v280_v26 = vadd.f32 %v279_v24, %v278_v23  ;;  %v269_v27 = vadd.f32 %v268_v25, %v267_v22 }
  0xd5   : > { %v281_v28 = vrot.slane %v280_v26, 2  ;;  %559 = vpush %v269_v27 }
  0xd7   : > { %v282_v29 = vadd.f32 %v281_v28, %v280_v26 }
  0xd9   : > { %v283_v30 = vrot.slane %v282_v29, 1 }
  0xdb   : > { %v284_v31 = vadd.f32 %v283_v30, %v282_v29 }
  0xdd   : > { %561 = vpush %v284_v31 }
 0x106   : > { %s560_s7 = spop %559 }
 0x107   : > { %s271_s15 = sadd.f32 %s560_s7, %s261_s29 }
 0x109   : > { %273 = sst [smem:[#allocation2]] %s271_s15 }
 0x10e   : > { %s562_s30 = spop %561 }
 0x10f   : > { %s286_s5 = sadd.f32 %s562_s30, %s546_s8 }
 0x111   : > { %288 = sst [smem:[#allocation2 + $0x1]] %s286_s5 }
 0x112 PF: > { %p548_p1 = scmp.ne.s32.totalorder %s863_s19, 3 }
 0x113   : > { %s316_s9 = sld [smem:[#allocation2]] (!%p548_p1)  ;;  %s819_s27 = smov (!%p548_p1), 1.0  }
 0x114   : > { %292 = sbr.rel (%p548_p1) target bundleno = 573 (0x23d), region = 56  ;;  %s549_s17 = sld [smem:[#allocation2 + $0x1]] (!%p548_p1) }
 0x119   : > { %v293_v32 = vlaneseq  ;;  %v296_v33 = vld [vmem:[%s192_s21] sm:$0xff]  ;;  %v298_v34 = vld [vmem:[%s202_s20] sm:$0xff]  ;;  %vm388_vm6 = vcmask 1040384   ;;  %v818_v23 = vmov 0.0  }
 0x11a   : > { %v369_v35 = vld [vmem:[#allocation8 + $0x1] sm:$0x1]  ;;  %v375_v38 = vld [vmem:[#allocation8 + $0x4] sm:$0x1]  ;;  %v377_v39 = vld [vmem:[#allocation8 + $0x5] sm:$0x1] }
 0x11b   : > { %v294_v36 = vshrl.u32 %v293_v32, 7  ;;  %v378_v37 = vmul.f32 0.25, %v369_v35  ;;  %v418_v43 = vsub.f32 %v375_v38, %v377_v39  ;;  %v371_v53 = vld [vmem:[#allocation8 + $0x2] sm:$0x1]  ;;  %v373_v55 = vld [vmem:[#allocation8 + $0x3] sm:$0x1] }
 0x11c   : > { %v367_v60 = vld [vmem:[#allocation8] sm:$0x1]  ;;  %v400_v62 = vsub.f32 %v371_v53, %v373_v55 }
 0x11d   : > { %vm295_vm2 = vcmp.lt.s32.totalorder %v294_v36, 3  ;;  %v571_v40 = vcvt.f32.s32 %v378_v37  ;;  %v569_v46 = vand.u32 2147483647, %v378_v37  ;;  %v574_v48 = vand.u32 2147483648, %v378_v37 }
 0x11e   : > { %v297_v41 = vsel %vm295_vm2, %v296_v33, 0.0  ;;  %v299_v42 = vsel %vm295_vm2, %v298_v34, 0.0  ;;  %v419_v56 = vand.u32 2147483647, %v418_v43  ;;  %v421_v57 = vmul.f32 0.5, %v418_v43 }
 0x11f   : > { %vm300_vm3 = vcmp.eq.f32.partialorder %v299_v42, 1.0  ;;  %v302_v44 = vsub.f32 1.0, %v297_v41  ;;  %v306_v45 = vsub.f32 1.0, %v299_v42  ;;  %v572_v47 = vcvt.s32.f32 %v571_v40 }
 0x120   : > { %v311_v51 = vmul.f32 %v297_v41, %v297_v41  ;;  %vm570_vm4 = vcmp.lt.f32.partialorder %v569_v46, 8388608.0  ;;  %vm420_vm5 = vcmp.lt.f32.partialorder %v419_v56, 1.0  ;;  %v422_v59 = vmul.f32 %v421_v57, %v418_v43 }
 0x121   : > { %v303_v49 = vsel %vm300_vm3, %v297_v41, %v302_v44  ;;  %v307_v50 = vmul.f32 %v306_v45, %v306_v45  ;;  %v573_v52 = vand.u32 2147483647, %v572_v47  ;;  %v554_v63 = vadd.f32 -0.5, %v419_v56 }
 0x122   : > { %657 = vlog2.f32 %v303_v49  ;;  %v309_v0 = vmul.f32 %v302_v44, %v302_v44  ;;  %vm301_vm7 = vcmp.lt.f32.partialorder %v299_v42, 1.0  ;;  %v401_v8 = vand.u32 2147483647, %v400_v62 }
 0x123   : > { %v308_v54 = vmul.f32 %v307_v50, %v307_v50  ;;  %v575_v58 = vor.u32 %v574_v48, %v573_v52  ;;  %v424_v4 = vsel %vm420_vm5, %v422_v59, %v554_v63  ;;  %v403_v9 = vmul.f32 0.5, %v400_v62 }
 0x124   : > { %v425_v7 = vsel %vm388_vm6, %v424_v4, 0.0  ;;  %v553_v20 = vadd.f32 -0.5, %v401_v8  ;;  %vm402_vm9 = vcmp.lt.f32.partialorder %v401_v8, 1.0  ;;  %v550_v24 = vsel %vm300_vm3, 1.0, %v818_v23 }
 0x125   : > { %v576_v61 = vsel %vm570_vm4, %v575_v58, %v378_v37  ;;  %v312_v1 = vmul.f32 %v311_v51, %v308_v54  ;;  %426 = vadd.xlane.f32.xlu2 %v425_v7  ;;  %v404_v19 = vmul.f32 %v403_v9, %v400_v62 }
 0x126   : > { %v380_v2 = vsub.f32 %v378_v37, %v576_v61 }
 0x127   : > { %v406_v22 = vsel %vm402_vm9, %v404_v19, %v553_v20 }
 0x128   : > { %v658_v3 = vpop.eup %657  ;;  %v381_v6 = vsub.f32 %v367_v60, %v380_v2  ;;  %v407_v25 = vsel %vm388_vm6, %v406_v22, 0.0 }
 0x129   : > { %v305_v5 = vmul.f32 0.6931472, %v658_v3 }
 0x12a   : > { %v382_v12 = vand.u32 2147483647, %v381_v6  ;;  %v384_v13 = vmul.f32 0.5, %v381_v6 }
 0x12b   : > { %v310_v10 = vmul.f32 %v309_v0, %v305_v5  ;;  %v313_v11 = vmul.f32 %v312_v1, %v305_v5 }
 0x12c   : > { %vm383_vm8 = vcmp.lt.f32.partialorder %v382_v12, 1.0  ;;  %v385_v15 = vmul.f32 %v384_v13, %v381_v6  ;;  %v552_v16 = vadd.f32 -0.5, %v382_v12 }
 0x12d   : > { %v314_v14 = vsel %vm301_vm7, %v313_v11, 0.0 }
 0x12e   : > { %v315_v17 = vsel %vm300_vm3, %v310_v10, %v314_v14  ;;  %v387_v18 = vsel %vm383_vm8, %v385_v15, %v552_v16 }
 0x12f   : > { %317 = vadd.xlane.f32.xlu0 %v315_v17  ;;  %v389_v21 = vsel %vm388_vm6, %v387_v18, 0.0 }
 0x130   : > { %390 = vadd.xlane.f32.xlu1 %v389_v21 }
 0x137   : > { %332 = vadd.xlane.f32.xlu0 %v550_v24 }
 0x138   : > { %408 = vadd.xlane.f32.xlu1 %v407_v25 }
 0x198   : > { %v427_v41 = vpop.xlane.xlu2 %426 }
 0x199   : > { %v428_v44 = vrot.slane %v427_v41, 4 }
 0x19b   : > { %v429_v48 = vadd.f32 %v428_v44, %v427_v41 }
 0x19d   : > { %v430_v51 = vrot.slane %v429_v48, 2 }
 0x19f   : > { %v431_v55 = vadd.f32 %v430_v51, %v429_v48 }
 0x1a1   : > { %v432_v63 = vrot.slane %v431_v55, 1 }
 0x1a2   : > { %v318_v26 = vpop.xlane.xlu0 %317 }
 0x1a3   : > { %v319_v27 = vrot.slane %v318_v26, 4  ;;  %v391_v40 = vpop.xlane.xlu1 %390  ;;  %v433_v6 = vadd.f32 %v432_v63, %v431_v55 }
 0x1a4   : > { %v392_v43 = vrot.slane %v391_v40, 4 }
 0x1a5   : > { %v320_v28 = vadd.f32 %v319_v27, %v318_v26 }
 0x1a6   : > { %v393_v47 = vadd.f32 %v392_v43, %v391_v40 }
 0x1a7   : > { %v321_v29 = vrot.slane %v320_v28, 2 }
 0x1a8   : > { %v394_v50 = vrot.slane %v393_v47, 2 }
 0x1a9   : > { %v322_v30 = vadd.f32 %v321_v29, %v320_v28 }
 0x1aa   : > { %v333_v31 = vpop.xlane.xlu0 %332  ;;  %v395_v56 = vadd.f32 %v394_v50, %v393_v47 }
 0x1ab   : > { %v334_v32 = vrot.slane %v333_v31, 4  ;;  %v323_v33 = vrot.slane %v322_v30, 1  ;;  %v409_v42 = vpop.xlane.xlu1 %408 }
 0x1ac   : > { %v410_v45 = vrot.slane %v409_v42, 4  ;;  %v396_v62 = vrot.slane %v395_v56, 1 }
 0x1ad   : > { %v335_v34 = vadd.f32 %v334_v32, %v333_v31  ;;  %v324_v35 = vadd.f32 %v323_v33, %v322_v30 }
 0x1ae   : > { %v411_v49 = vadd.f32 %v410_v45, %v409_v42  ;;  %v397_v5 = vadd.f32 %v396_v62, %v395_v56 }
 0x1af   : > { %v336_v36 = vrot.slane %v335_v34, 2  ;;  %563 = vpush %v324_v35 }
 0x1b0   : > { %v412_v52 = vrot.slane %v411_v49, 2 }
 0x1b1   : > { %v337_v37 = vadd.f32 %v336_v36, %v335_v34 }
 0x1b2   : > { %v413_v57 = vadd.f32 %v412_v52, %v411_v49 }
 0x1b3   : > { %v338_v38 = vrot.slane %v337_v37, 1 }
 0x1b4   : > { %v414_v1 = vrot.slane %v413_v57, 1 }
 0x1b5   : > { %v339_v39 = vadd.f32 %v338_v38, %v337_v37 }
 0x1b6   : > { %v415_v7 = vadd.f32 %v414_v1, %v413_v57 }
 0x1b7   : > { %565 = vpush %v339_v39 }
 0x1e0   : > { %s564_s16 = spop %563 }
 0x1e1   : > { %s980_s23 = sadd.f32 %s564_s16, %s316_s9 }
 0x1e3   : > { %328 = sst [smem:[#allocation2]] %s980_s23 }
 0x1e4   : > { %s347_s4 = ssub.f32 0.0, %s980_s23 }
 0x1e8   : > { %s566_s24 = spop %565 }
 0x1e9   : > { %s983_s26 = sadd.f32 %s566_s24, %s549_s17 }
 0x1eb   : > { %343 = sst [smem:[#allocation2 + $0x1]] %s983_s26  ;;  %s348_s10 = smax.f32 %s819_s27, %s983_s26 }
 0x1ec   : > { %v349_v46 = vstv %s348_s10  ;;  %p346_p11 = scmp.eq.f32.partialorder %s983_s26, 0.0 }
 0x1ed   : > { %659 = vrcp.f32 %v349_v46  ;;  %v361_v59 = vand.u32 2147483648, %v349_v46  ;;  %v359_v61 = vand.u32 2147483647, %v349_v46  ;;  %vm355_vm11 = vweird.f32 %v349_v46 }
 0x1ef   : > { %v362_v2 = vor.u32 1.1754944e-38, %v361_v59  ;;  %vm360_vm13 = vcmp.eq.f32.partialorder %v359_v61, 8.507059e+37 }
 0x1f3   : > { %v660_v53 = vpop.eup %659 }
 0x1f4   : > { %v351_v54 = vmul.f32 %v660_v53, %v349_v46  ;;  %vm356_vm10 = vweird.f32 %v660_v53 }
 0x1f5   : > { %vm357_vm12 = vmor %vm355_vm11, %vm356_vm10 }
 0x1f6   : > { %v352_v58 = vsub.f32 1.0, %v351_v54 }
 0x1f8   : > { %v353_v60 = vmul.f32 %v660_v53, %v352_v58 }
 0x1fa   : > { %v354_v0 = vadd.f32 %v660_v53, %v353_v60 }
 0x1fc   : > { %v358_v3 = vsel %vm357_vm12, %v660_v53, %v354_v0 }
 0x1fd   : > { %v363_v4 = vsel %vm360_vm13, %v362_v2, %v358_v3 }
 0x1fe   : > { %567 = vpush %v363_v4 }
 0x1ff   : > { %577 = vpush %v397_v5 }
 0x200   : > { %579 = vpush %v415_v7 }
 0x201   : > { %581 = vpush %v433_v6 }
 0x22f   : > { %s568_s11 = spop %567 }
 0x230   : > { %s365_s18 = smul.f32 %s568_s11, %s347_s4  ;;  %s578_s21 = spop %577 }
 0x231   : > { %s580_s12 = spop %579  ;;  %s399_s29 = smul.f32 0.0078125, %s578_s21 }
 0x232   : > { %s1018_s4 = smov (!%p346_p11, %s347_s4), %s365_s18  ;;  %s417_s22 = smul.f32 0.0078125, %s580_s12 }
 0x233   : > { %s582_s6 = spop %581 }
 0x234   : > { %s436_s20 = smul.f32 0.1, %s417_s22 }
 0x235   : > { %s435_s8 = smul.f32 0.0078125, %s582_s6 }
 0x236   : > { %s437_s7 = sadd.f32 %s436_s20, %s1018_s4 }
 0x238   : > { %s438_s15 = sadd.f32 %s437_s7, %s399_s29 }
 0x23a   : > { %s439_s30 = sadd.f32 %s438_s15, %s435_s8 }
 0x23c   : > { %441 = sst [smem:[#allocation9]] %s439_s30 }
 0x23d PF: > { %p613_p13 = scmp.eq.s32.totalorder %s863_s19, 3  ;;  %s448_s16 = sshll.u32 %s1009_s3, 4  ;;  %s449_s16 = int_to_ptr.hbm [resolvable:$true] %s448_s16 }
 0x23e   : > { %s820_s17 = smov [#allocation9]  }
 0x23f   : > { %595 = dma.smem_to_hbm (%p613_p13), %s820_s17, 16, %s449_s16, [#allocation5]  }
 0x240   : > { %794 = dma.done.wait (%p613_p13), [#allocation5], 16  }
 0x241   : > { %796 = vsyncadd (%p613_p13), [#allocation5], 4294967280 }
 0x242   : > { %457 = sfence }
 0x243 PF: > { %p17_p2 = scmp.ge.s32.totalorder %s877_s25, 6   ;;  %s1013_s12 = smov %s803_s13 }
 0x244   : > { %s1014_s13 = smov %s807_s14  ;;  %s1015_s14 = smov %s887_s28 }
 0x245   : > { %s1016_s15 = smov %s877_s25  ;;  %19 = sbr.rel (!%p17_p2) target bundleno = 6 (0x6), region = 110 }
 0x24a   :  { %463 = vsyncpa [#allocation4], 1 }
 0x24b   :  { %465 = vsyncpa [#allocation4 + $0x1], 1 }
 0x24c   :  { %466 = vsyncpa [#allocation7], 1 }
 0x24d   :  { %468 = vsyncpa [#allocation7 + $0x1], 1 }
 0x24e   :  { %469 = vsyncpa [#allocation5], 1 }
 0x24f   :  { %471 = vsyncpa [#allocation5 + $0x1], 1 }

</bundles_post_ra>
